<compile_context>
chip_gen: v6e
topology: v6e:2x2x1
jax: 0.10.0
libtpu: 0.0.40
codegen_flags: <defaults>
</compile_context>

<pallas_src>
import functools

import numpy as np
import jax
import jax.numpy as jnp
from jax.experimental import pallas as pl
from jax.experimental.pallas import tpu as pltpu

LANE = 128        # lane width; all feature dims here are <= 128
BN_EPS = 1e-5
NEG_SLOPE = 0.2


# ----------------------------- fused kernel ---------------------------------

def _fused_mlp_kernel(x_ref, w_ref, b_ref, g_ref, bt_ref, o_ref, *,
                      num_layers, input_dim):
    # x_ref : [B, input_dim]   f32  (unpadded input)
    # w_ref : [L, 128, 128]    bf16 (zero-padded [D_in, D_out] per layer)
    # b_ref : [L, 1, 128]      f32  (zero-padded bias)
    # g_ref : [L, 1, 128]      f32  (zero-padded BN gamma; 0 in padded lanes)
    # bt_ref: [L, 1, 128]      f32  (zero-padded BN beta)
    y = x_ref[...].astype(jnp.float32)
    for i in range(num_layers):                      # static unrolled layer loop
        w = w_ref[i]                                 # (128, 128) bf16
        if i == 0:
            w = w[:input_dim, :]                     # free static VMEM slice
        # Linear: bf16 x bf16 MXU operands, f32 accumulation, f32 bias add.
        y = jnp.dot(y.astype(jnp.bfloat16), w,
                    preferred_element_type=jnp.float32) + b_ref[i]
        if i < num_layers - 1:
            # LeakyReLU(0.2) — max form.
            y = jnp.maximum(y, NEG_SLOPE * y)
            # BatchNorm1d, training mode: centered batch stats, biased variance,
            # eps = 1e-5, affine folded into one FMA.
            mean = jnp.mean(y, axis=0, keepdims=True)
            d = y - mean
            var = jnp.mean(d * d, axis=0, keepdims=True)
            scale = g_ref[i] * jax.lax.rsqrt(var + BN_EPS)
            y = d * scale + bt_ref[i]
            # Padded lanes stay exactly 0: gamma/beta padding is 0.
    o_ref[...] = y.astype(o_ref.dtype)


# ----------------------------- model setup ----------------------------------

def layer_dims(input_dim, output_dim, num_layers):
    # replicates torch.linspace(input_dim, output_dim, num_layers).to(int32)
    return [int(d) for d in
            np.linspace(input_dim, output_dim, num_layers).astype(np.int32)]


def init_params(key, input_dim, output_dim, num_layers):
    """Returns (padded stacked params for the kernel, raw params for reference)."""
    dims = layer_dims(input_dim, output_dim, num_layers)
    assert input_dim <= LANE and max(dims) <= LANE, "this kernel assumes dims <= 128"
    Wp, Bp, Gp, Tp, raw = [], [], [], [], []
    in_d = input_dim
    for out_d in dims:
        key, kw, kb = jax.random.split(key, 3)
        bound = 1.0 / np.sqrt(in_d)
        w = jax.random.uniform(kw, (in_d, out_d), jnp.float32, -bound, bound)
        b = jax.random.uniform(kb, (out_d,), jnp.float32, -bound, bound)
        gamma = jnp.ones((out_d,), jnp.float32)     # PyTorch BatchNorm1d defaults
        beta = jnp.zeros((out_d,), jnp.float32)
        # Weights are stored in bf16 (halves the dominant HBM traffic).  The
        # reference uses the identical bf16-rounded values (in f32).
        w_bf = w.astype(jnp.bfloat16)
        raw.append((w_bf.astype(jnp.float32), b, gamma, beta))
        Wp.append(jnp.zeros((LANE, LANE), jnp.bfloat16).at[:in_d, :out_d].set(w_bf))
        Bp.append(jnp.zeros((1, LANE), jnp.float32).at[0, :out_d].set(b))
        Gp.append(jnp.zeros((1, LANE), jnp.float32).at[0, :out_d].set(gamma))
        Tp.append(jnp.zeros((1, LANE), jnp.float32).at[0, :out_d].set(beta))
        in_d = out_d
    stacked = (jnp.stack(Wp), jnp.stack(Bp), jnp.stack(Gp), jnp.stack(Tp))
    return stacked, raw, dims


# ----------------------------- forward --------------------------------------

@functools.partial(jax.jit, static_argnames=("input_dim", "output_dim", "num_layers"))
def mlp_forward(x, w_stack, b_stack, g_stack, bt_stack, *,
                input_dim, output_dim, num_layers):
    B = x.shape[0]
    L = num_layers
    cost = pl.CostEstimate(
        flops=int(2 * B * LANE * LANE * L),
        transcendentals=int((L - 1) * LANE),                 # rsqrt per BN feature
        bytes_accessed=int(w_stack.size * 2
                           + (b_stack.size + g_stack.size + bt_stack.size) * 4
                           + x.size * 4 + B * LANE * 4),
    )
    vmem = pl.BlockSpec(memory_space=pltpu.MemorySpace.VMEM)
    out_pad = pl.pallas_call(
        functools.partial(_fused_mlp_kernel,
                          num_layers=num_layers, input_dim=input_dim),
        out_shape=jax.ShapeDtypeStruct((B, LANE), x.dtype),
        in_specs=[vmem, vmem, vmem, vmem, vmem],
        out_specs=vmem,
        cost_estimate=cost,
    )(x, w_stack, b_stack, g_stack, bt_stack)
    return out_pad[:, :output_dim]


# ----------------------------- reference ------------------------------------

def mlp_reference(x, raw_params):
    """Pure-JAX f32 replica of the PyTorch forward (training-mode BN)."""
    n = len(raw_params)
    y = x.astype(jnp.float32)
    for i, (w, b, g, bt) in enumerate(raw_params):
        y = y @ w + b
        if i < n - 1:
            y = jnp.where(y >= 0.0, y, NEG_SLOPE * y)
            m = jnp.mean(y, axis=0, keepdims=True)
            v = jnp.mean((y - m) ** 2, axis=0, keepdims=True)
            y = (y - m) / jnp.sqrt(v + BN_EPS) * g + bt
    return y


# ----------------------------- main -----------------------------------------

if __name__ == "__main__":
    # small config consistent with the module's construction logic
    # (B a multiple of 8 so no batch padding perturbs BN statistics)
    B, INPUT_DIM, OUTPUT_DIM, NUM_LAYERS = 8, 64, 10, 4

    key = jax.random.PRNGKey(0)
    key, kx = jax.random.split(key)
    x = jax.random.normal(kx, (B, INPUT_DIM), jnp.float32)

    (w_s, b_s, g_s, bt_s), raw_params, dims = init_params(
        key, INPUT_DIM, OUTPUT_DIM, NUM_LAYERS)

    out = mlp_forward(x, w_s, b_s, g_s, bt_s,
                      input_dim=INPUT_DIM, output_dim=OUTPUT_DIM,
                      num_layers=NUM_LAYERS)
    out = jax.block_until_ready(out)

    assert out.shape == (B, OUTPUT_DIM), out.shape
    assert out.dtype == jnp.float32, out.dtype

    # Correctness vs. a pure-JAX f32 reference that uses the same (bf16-rounded)
    # weights.  Residual error comes only from bf16 rounding of activations on
    # the MXU path (~1e-3 level, slightly amplified by per-layer BN).
    ref = mlp_reference(x, raw_params)
    np.testing.assert_allclose(np.asarray(out), np.asarray(ref),
                               rtol=2e-2, atol=2e-2)

    print("KERNEL_OK")
</pallas_src>

<mosaic_0001>
module attributes {stable_mosaic.version = 11 : i64} {
  func.func @_fused_mlp_kernel(%arg0: memref<8x64xf32, #tpu.memory_space<vmem>>, %arg1: memref<4x128x128xbf16, #tpu.memory_space<vmem>>, %arg2: memref<4x1x128xf32, #tpu.memory_space<vmem>>, %arg3: memref<4x1x128xf32, #tpu.memory_space<vmem>>, %arg4: memref<4x1x128xf32, #tpu.memory_space<vmem>>, %arg5: memref<8x128xf32, #tpu.memory_space<vmem>>) attributes {dimension_semantics = [], scalar_prefetch = 0 : i64, scratch_operands = 0 : i64, tpu.core_type = #tpu.core_type<tc>} {
    %c0 = arith.constant 0 : index
    %c0_0 = arith.constant 0 : index
    %0 = vector.load %arg0[%c0, %c0_0] : memref<8x64xf32, #tpu.memory_space<vmem>>, vector<8x64xf32>
    %c0_1 = arith.constant 0 : index
    %c0_2 = arith.constant 0 : index
    %c0_3 = arith.constant 0 : index
    %1 = vector.load %arg1[%c0_1, %c0_2, %c0_3] : memref<4x128x128xbf16, #tpu.memory_space<vmem>>, vector<1x128x128xbf16>
    %2 = vector.shape_cast %1 : vector<1x128x128xbf16> to vector<128x128xbf16>
    %3 = vector.extract_strided_slice %2 {offsets = [0, 0], sizes = [64, 128], strides = [1, 1]} : vector<128x128xbf16> to vector<64x128xbf16>
    %4 = arith.truncf %0 : vector<8x64xf32> to vector<8x64xbf16>
    %cst = arith.constant dense<0.000000e+00> : vector<8x128xf32>
    %5 = tpu.matmul %4, %3, %cst {dimension_numbers = #tpu.dot_dimension_numbers<[1], [0], [0], [1], [0, 0, 1, 1], [], []>} : vector<8x64xbf16>, vector<64x128xbf16>, vector<8x128xf32> -> vector<8x128xf32>
    %c0_4 = arith.constant 0 : index
    %c0_5 = arith.constant 0 : index
    %c0_6 = arith.constant 0 : index
    %6 = vector.load %arg2[%c0_4, %c0_5, %c0_6] : memref<4x1x128xf32, #tpu.memory_space<vmem>>, vector<1x1x128xf32>
    %7 = vector.shape_cast %6 : vector<1x1x128xf32> to vector<1x128xf32>
    %8 = vector.broadcast %7 : vector<1x128xf32> to vector<8x128xf32>
    %9 = arith.addf %5, %8 : vector<8x128xf32>
    %cst_7 = arith.constant 2.000000e-01 : f32
    %10 = vector.broadcast %cst_7 : f32 to vector<8x128xf32>
    %11 = arith.mulf %10, %9 : vector<8x128xf32>
    %12 = arith.maximumf %9, %11 : vector<8x128xf32>
    %cst_8 = arith.constant dense<0.000000e+00> : vector<128xf32>
    %13 = vector.multi_reduction <add>, %12, %cst_8 [0] : vector<8x128xf32> to vector<128xf32>
    %14 = vector.shape_cast %13 : vector<128xf32> to vector<1x128xf32>
    %cst_9 = arith.constant 8.000000e+00 : f32
    %15 = vector.broadcast %cst_9 : f32 to vector<1x128xf32>
    %16 = arith.divf %14, %15 : vector<1x128xf32>
    %17 = vector.broadcast %16 : vector<1x128xf32> to vector<8x128xf32>
    %18 = arith.subf %12, %17 : vector<8x128xf32>
    %19 = arith.mulf %18, %18 : vector<8x128xf32>
    %cst_10 = arith.constant dense<0.000000e+00> : vector<128xf32>
    %20 = vector.multi_reduction <add>, %19, %cst_10 [0] : vector<8x128xf32> to vector<128xf32>
    %21 = vector.shape_cast %20 : vector<128xf32> to vector<1x128xf32>
    %cst_11 = arith.constant 8.000000e+00 : f32
    %22 = vector.broadcast %cst_11 : f32 to vector<1x128xf32>
    %23 = arith.divf %21, %22 : vector<1x128xf32>
    %c0_12 = arith.constant 0 : index
    %c0_13 = arith.constant 0 : index
    %c0_14 = arith.constant 0 : index
    %24 = vector.load %arg3[%c0_12, %c0_13, %c0_14] : memref<4x1x128xf32, #tpu.memory_space<vmem>>, vector<1x1x128xf32>
    %25 = vector.shape_cast %24 : vector<1x1x128xf32> to vector<1x128xf32>
    %cst_15 = arith.constant 9.99999974E-6 : f32
    %26 = vector.broadcast %cst_15 : f32 to vector<1x128xf32>
    %27 = arith.addf %23, %26 : vector<1x128xf32>
    %28 = math.rsqrt %27 : vector<1x128xf32>
    %29 = arith.mulf %25, %28 : vector<1x128xf32>
    %30 = vector.broadcast %29 : vector<1x128xf32> to vector<8x128xf32>
    %31 = arith.mulf %18, %30 : vector<8x128xf32>
    %c0_16 = arith.constant 0 : index
    %c0_17 = arith.constant 0 : index
    %c0_18 = arith.constant 0 : index
    %32 = vector.load %arg4[%c0_16, %c0_17, %c0_18] : memref<4x1x128xf32, #tpu.memory_space<vmem>>, vector<1x1x128xf32>
    %33 = vector.shape_cast %32 : vector<1x1x128xf32> to vector<1x128xf32>
    %34 = vector.broadcast %33 : vector<1x128xf32> to vector<8x128xf32>
    %35 = arith.addf %31, %34 : vector<8x128xf32>
    %c1 = arith.constant 1 : index
    %c0_19 = arith.constant 0 : index
    %c0_20 = arith.constant 0 : index
    %36 = vector.load %arg1[%c1, %c0_19, %c0_20] : memref<4x128x128xbf16, #tpu.memory_space<vmem>>, vector<1x128x128xbf16>
    %37 = vector.shape_cast %36 : vector<1x128x128xbf16> to vector<128x128xbf16>
    %38 = arith.truncf %35 : vector<8x128xf32> to vector<8x128xbf16>
    %cst_21 = arith.constant dense<0.000000e+00> : vector<8x128xf32>
    %39 = tpu.matmul %38, %37, %cst_21 {dimension_numbers = #tpu.dot_dimension_numbers<[1], [0], [0], [1], [0, 0, 1, 1], [], []>} : vector<8x128xbf16>, vector<128x128xbf16>, vector<8x128xf32> -> vector<8x128xf32>
    %c1_22 = arith.constant 1 : index
    %c0_23 = arith.constant 0 : index
    %c0_24 = arith.constant 0 : index
    %40 = vector.load %arg2[%c1_22, %c0_23, %c0_24] : memref<4x1x128xf32, #tpu.memory_space<vmem>>, vector<1x1x128xf32>
    %41 = vector.shape_cast %40 : vector<1x1x128xf32> to vector<1x128xf32>
    %42 = vector.broadcast %41 : vector<1x128xf32> to vector<8x128xf32>
    %43 = arith.addf %39, %42 : vector<8x128xf32>
    %cst_25 = arith.constant 2.000000e-01 : f32
    %44 = vector.broadcast %cst_25 : f32 to vector<8x128xf32>
    %45 = arith.mulf %44, %43 : vector<8x128xf32>
    %46 = arith.maximumf %43, %45 : vector<8x128xf32>
    %cst_26 = arith.constant dense<0.000000e+00> : vector<128xf32>
    %47 = vector.multi_reduction <add>, %46, %cst_26 [0] : vector<8x128xf32> to vector<128xf32>
    %48 = vector.shape_cast %47 : vector<128xf32> to vector<1x128xf32>
    %cst_27 = arith.constant 8.000000e+00 : f32
    %49 = vector.broadcast %cst_27 : f32 to vector<1x128xf32>
    %50 = arith.divf %48, %49 : vector<1x128xf32>
    %51 = vector.broadcast %50 : vector<1x128xf32> to vector<8x128xf32>
    %52 = arith.subf %46, %51 : vector<8x128xf32>
    %53 = arith.mulf %52, %52 : vector<8x128xf32>
    %cst_28 = arith.constant dense<0.000000e+00> : vector<128xf32>
    %54 = vector.multi_reduction <add>, %53, %cst_28 [0] : vector<8x128xf32> to vector<128xf32>
    %55 = vector.shape_cast %54 : vector<128xf32> to vector<1x128xf32>
    %cst_29 = arith.constant 8.000000e+00 : f32
    %56 = vector.broadcast %cst_29 : f32 to vector<1x128xf32>
    %57 = arith.divf %55, %56 : vector<1x128xf32>
    %c1_30 = arith.constant 1 : index
    %c0_31 = arith.constant 0 : index
    %c0_32 = arith.constant 0 : index
    %58 = vector.load %arg3[%c1_30, %c0_31, %c0_32] : memref<4x1x128xf32, #tpu.memory_space<vmem>>, vector<1x1x128xf32>
    %59 = vector.shape_cast %58 : vector<1x1x128xf32> to vector<1x128xf32>
    %cst_33 = arith.constant 9.99999974E-6 : f32
    %60 = vector.broadcast %cst_33 : f32 to vector<1x128xf32>
    %61 = arith.addf %57, %60 : vector<1x128xf32>
    %62 = math.rsqrt %61 : vector<1x128xf32>
    %63 = arith.mulf %59, %62 : vector<1x128xf32>
    %64 = vector.broadcast %63 : vector<1x128xf32> to vector<8x128xf32>
    %65 = arith.mulf %52, %64 : vector<8x128xf32>
    %c1_34 = arith.constant 1 : index
    %c0_35 = arith.constant 0 : index
    %c0_36 = arith.constant 0 : index
    %66 = vector.load %arg4[%c1_34, %c0_35, %c0_36] : memref<4x1x128xf32, #tpu.memory_space<vmem>>, vector<1x1x128xf32>
    %67 = vector.shape_cast %66 : vector<1x1x128xf32> to vector<1x128xf32>
    %68 = vector.broadcast %67 : vector<1x128xf32> to vector<8x128xf32>
    %69 = arith.addf %65, %68 : vector<8x128xf32>
    %c2 = arith.constant 2 : index
    %c0_37 = arith.constant 0 : index
    %c0_38 = arith.constant 0 : index
    %70 = vector.load %arg1[%c2, %c0_37, %c0_38] : memref<4x128x128xbf16, #tpu.memory_space<vmem>>, vector<1x128x128xbf16>
    %71 = vector.shape_cast %70 : vector<1x128x128xbf16> to vector<128x128xbf16>
    %72 = arith.truncf %69 : vector<8x128xf32> to vector<8x128xbf16>
    %cst_39 = arith.constant dense<0.000000e+00> : vector<8x128xf32>
    %73 = tpu.matmul %72, %71, %cst_39 {dimension_numbers = #tpu.dot_dimension_numbers<[1], [0], [0], [1], [0, 0, 1, 1], [], []>} : vector<8x128xbf16>, vector<128x128xbf16>, vector<8x128xf32> -> vector<8x128xf32>
    %c2_40 = arith.constant 2 : index
    %c0_41 = arith.constant 0 : index
    %c0_42 = arith.constant 0 : index
    %74 = vector.load %arg2[%c2_40, %c0_41, %c0_42] : memref<4x1x128xf32, #tpu.memory_space<vmem>>, vector<1x1x128xf32>
    %75 = vector.shape_cast %74 : vector<1x1x128xf32> to vector<1x128xf32>
    %76 = vector.broadcast %75 : vector<1x128xf32> to vector<8x128xf32>
    %77 = arith.addf %73, %76 : vector<8x128xf32>
    %cst_43 = arith.constant 2.000000e-01 : f32
    %78 = vector.broadcast %cst_43 : f32 to vector<8x128xf32>
    %79 = arith.mulf %78, %77 : vector<8x128xf32>
    %80 = arith.maximumf %77, %79 : vector<8x128xf32>
    %cst_44 = arith.constant dense<0.000000e+00> : vector<128xf32>
    %81 = vector.multi_reduction <add>, %80, %cst_44 [0] : vector<8x128xf32> to vector<128xf32>
    %82 = vector.shape_cast %81 : vector<128xf32> to vector<1x128xf32>
    %cst_45 = arith.constant 8.000000e+00 : f32
    %83 = vector.broadcast %cst_45 : f32 to vector<1x128xf32>
    %84 = arith.divf %82, %83 : vector<1x128xf32>
    %85 = vector.broadcast %84 : vector<1x128xf32> to vector<8x128xf32>
    %86 = arith.subf %80, %85 : vector<8x128xf32>
    %87 = arith.mulf %86, %86 : vector<8x128xf32>
    %cst_46 = arith.constant dense<0.000000e+00> : vector<128xf32>
    %88 = vector.multi_reduction <add>, %87, %cst_46 [0] : vector<8x128xf32> to vector<128xf32>
    %89 = vector.shape_cast %88 : vector<128xf32> to vector<1x128xf32>
    %cst_47 = arith.constant 8.000000e+00 : f32
    %90 = vector.broadcast %cst_47 : f32 to vector<1x128xf32>
    %91 = arith.divf %89, %90 : vector<1x128xf32>
    %c2_48 = arith.constant 2 : index
    %c0_49 = arith.constant 0 : index
    %c0_50 = arith.constant 0 : index
    %92 = vector.load %arg3[%c2_48, %c0_49, %c0_50] : memref<4x1x128xf32, #tpu.memory_space<vmem>>, vector<1x1x128xf32>
    %93 = vector.shape_cast %92 : vector<1x1x128xf32> to vector<1x128xf32>
    %cst_51 = arith.constant 9.99999974E-6 : f32
    %94 = vector.broadcast %cst_51 : f32 to vector<1x128xf32>
    %95 = arith.addf %91, %94 : vector<1x128xf32>
    %96 = math.rsqrt %95 : vector<1x128xf32>
    %97 = arith.mulf %93, %96 : vector<1x128xf32>
    %98 = vector.broadcast %97 : vector<1x128xf32> to vector<8x128xf32>
    %99 = arith.mulf %86, %98 : vector<8x128xf32>
    %c2_52 = arith.constant 2 : index
    %c0_53 = arith.constant 0 : index
    %c0_54 = arith.constant 0 : index
    %100 = vector.load %arg4[%c2_52, %c0_53, %c0_54] : memref<4x1x128xf32, #tpu.memory_space<vmem>>, vector<1x1x128xf32>
    %101 = vector.shape_cast %100 : vector<1x1x128xf32> to vector<1x128xf32>
    %102 = vector.broadcast %101 : vector<1x128xf32> to vector<8x128xf32>
    %103 = arith.addf %99, %102 : vector<8x128xf32>
    %c3 = arith.constant 3 : index
    %c0_55 = arith.constant 0 : index
    %c0_56 = arith.constant 0 : index
    %104 = vector.load %arg1[%c3, %c0_55, %c0_56] : memref<4x128x128xbf16, #tpu.memory_space<vmem>>, vector<1x128x128xbf16>
    %105 = vector.shape_cast %104 : vector<1x128x128xbf16> to vector<128x128xbf16>
    %106 = arith.truncf %103 : vector<8x128xf32> to vector<8x128xbf16>
    %cst_57 = arith.constant dense<0.000000e+00> : vector<8x128xf32>
    %107 = tpu.matmul %106, %105, %cst_57 {dimension_numbers = #tpu.dot_dimension_numbers<[1], [0], [0], [1], [0, 0, 1, 1], [], []>} : vector<8x128xbf16>, vector<128x128xbf16>, vector<8x128xf32> -> vector<8x128xf32>
    %c3_58 = arith.constant 3 : index
    %c0_59 = arith.constant 0 : index
    %c0_60 = arith.constant 0 : index
    %108 = vector.load %arg2[%c3_58, %c0_59, %c0_60] : memref<4x1x128xf32, #tpu.memory_space<vmem>>, vector<1x1x128xf32>
    %109 = vector.shape_cast %108 : vector<1x1x128xf32> to vector<1x128xf32>
    %110 = vector.broadcast %109 : vector<1x128xf32> to vector<8x128xf32>
    %111 = arith.addf %107, %110 : vector<8x128xf32>
    %c0_61 = arith.constant 0 : index
    %c0_62 = arith.constant 0 : index
    %112 = vector.load %arg5[%c0_61, %c0_62] : memref<8x128xf32, #tpu.memory_space<vmem>>, vector<8x128xf32>
    tpu.vector_store %arg5[%c0_61, %c0_62], %111 {strides = array<i32>} : memref<8x128xf32, #tpu.memory_space<vmem>>, vector<8x128xf32>,
    return
  }
}

</mosaic_0001>

<bundles_post_ra>
// kernel: mlp_forward.1
= control target key start
LH: loop header
LB: loop body
LE: loop exit
PB: predicated region body
PF: predicated region fallthrough
CT: control target
= control target key end

     0   :  { %10 = vsyncpa [#allocation3], 0  ;;  %s1037_s0 = inlined_call_operand.hbm [shape: f32[8,64], index: 0, kind: input, shape index: {}]   ;;  %s1038_s1 = inlined_call_operand.hbm [shape: bf16[4,128,128], index: 1, kind: input, shape index: {}]   ;;  %s1039_s2 = inlined_call_operand.hbm [shape: f32[4,1,128], index: 2, kind: input, shape index: {}]   ;;  %s1040_s3 = inlined_call_operand.vmem [shape: f32[4,1,128], index: 3, kind: input, shape index: {}]   ;;  %s1041_s4 = inlined_call_operand.hbm [shape: f32[4,1,128], index: 4, kind: input, shape index: {}]   ;;  %s1042_s5 = inlined_call_operand.hbm [shape: f32[8,128], index: 5, kind: output, shape index: {}]  }
   0x1   :  { %11 = vsyncpa [#allocation6], 0 }
   0x2   :  { %12 = vsyncpa [#allocation9], 0 }
   0x3   :  { %13 = vsyncpa [#allocation4], 0  ;;  %s931_s18 = smov [#allocation5]  }
   0x4   :  { %s29_s19 = sshll.u32 %s931_s18, 4  ;;  %s30_s19 = int_to_ptr.vmem [resolvable:$true] %s29_s19 }
   0x5   :  { %s831_s20 = scalar_lea.vmem %s30_s19, 4096  ;;  %p836_p1 = scmp.lt.s32.totalorder %s30_s19, %s30_s19 }
   0x6   :  { %p832_p0 = scmp.ne.s32.totalorder %s30_s19, %s831_s20  ;;  %p837_p2 = scmp.lt.s32.totalorder %s831_s20, %s831_s20 }
   0x8   :  { %p838_p3 = por %p837_p2, %p836_p1 }
   0xa   :  { %p839_p4 = pnand %p838_p3, %p832_p0 }
   0xc   :  { %842 = shalt.err (!%p839_p4)
}
   0xd   :  { %s932_s21 = smov 64   ;;  %s933_s22 = smov 4  }
   0xe   :  { %35 = dma.hbm_to_vmem [thread:$0]  %s1038_s1, 4096, %s30_s19, [#allocation6], %s932_s21, %s932_s21, %s933_s22  }
   0xf   :  { %s934_s25 = smov [#allocation2]   ;;  %s935_s27 = smov [#allocation7]  }
  0x10   :  { %s20_s26 = sshll.u32 %s934_s25, 4  ;;  %s41_s28 = sshll.u32 %s935_s27, 4  ;;  %s21_s26 = int_to_ptr.vmem [resolvable:$true] %s20_s26  ;;  %s42_s28 = int_to_ptr.vmem [resolvable:$true] %s41_s28 }
  0x11   :  { %s851_s29 = scalar_lea.vmem %s21_s26, 128  ;;  %p856_p6 = scmp.lt.s32.totalorder %s21_s26, %s21_s26 }
  0x12   :  { %p852_p5 = scmp.ne.s32.totalorder %s21_s26, %s851_s29  ;;  %p857_p7 = scmp.lt.s32.totalorder %s851_s29, %s851_s29 }
  0x14   :  { %p858_p8 = por %p857_p7, %p856_p6 }
  0x16   :  { %p859_p9 = pnand %p858_p8, %p852_p5 }
  0x18   :  { %862 = shalt.err (!%p859_p9)
}
  0x19   :  { %23 = dma.hbm_to_vmem [thread:$0]  %s1037_s0, 128, %s21_s26, [#allocation3]  }
  0x1a   :  { %s871_s7 = scalar_lea.vmem %s42_s28, 64  ;;  %p876_p11 = scmp.lt.s32.totalorder %s42_s28, %s42_s28 }
  0x1b   :  { %p872_p10 = scmp.ne.s32.totalorder %s42_s28, %s871_s7  ;;  %p877_p12 = scmp.lt.s32.totalorder %s871_s7, %s871_s7 }
  0x1d   :  { %p878_p13 = por %p877_p12, %p876_p11 }
  0x1f   :  { %p879_p0 = pnand %p878_p13, %p872_p10 }
  0x21   :  { %882 = shalt.err (!%p879_p0)
}
  0x22   :  { %s936_s1 = smov 16   ;;  %s937_s8 = smov 1  }
  0x23   :  { %47 = dma.hbm_to_vmem [thread:$0]  %s1039_s2, 64, %s42_s28, [#allocation6], %s936_s1, %s936_s1, %s937_s8  }
  0x24   :  { %s938_s11 = smov [#allocation8]  }
  0x25   :  { %s55_s12 = sshll.u32 %s938_s11, 4  ;;  %s56_s12 = int_to_ptr.vmem [resolvable:$true] %s55_s12 }
  0x26   :  { %s891_s13 = scalar_lea.vmem %s56_s12, 64  ;;  %p896_p2 = scmp.lt.s32.totalorder %s56_s12, %s56_s12 }
  0x27   :  { %p892_p1 = scmp.ne.s32.totalorder %s56_s12, %s891_s13  ;;  %p897_p3 = scmp.lt.s32.totalorder %s891_s13, %s891_s13 }
  0x29   :  { %p898_p4 = por %p897_p3, %p896_p2 }
  0x2b   :  { %p899_p5 = pnand %p898_p4, %p892_p1 }
  0x2d   :  { %902 = shalt.err (!%p899_p5)
}
  0x2e   :  { %61 = dma.hbm_to_vmem [thread:$0]  %s1041_s4, 64, %s56_s12, [#allocation9], %s936_s1, %s936_s1, %s937_s8  }
  0x2f   :  { %923 = dma.done.wait [#allocation3], 128  }
  0x30   :  { %924 = vsyncadd [#allocation3], 4294967168 }
  0x31   :  { %925 = dma.done.wait [#allocation6], 4160  }
  0x32   :  { %926 = vsyncadd [#allocation6], 4294963136 }
  0x33   :  { %927 = dma.done.wait [#allocation9], 64  }
  0x34   :  { %928 = vsyncadd [#allocation9], 4294967232  ;;  %v939_v0 = vmov 0.0   ;;  %vm940_vm0 = vmmov 0   ;;  %v789_v1 = vld [vmem:[#allocation5 + $0x18] sm:$0xff]   ;;  %v790_v2 = vld [vmem:[#allocation5 + $0x10] sm:$0xff]   ;;  %v184_v40 = vlaneseq }
  0x35   :  { %706 = vmatprep.subr.bf16.mxu0 %v939_v0  ;;  %714 = vmatprep.mubr.msk.bf16.mxu0 %vm940_vm0, %v939_v0  ;;  %v791_v3 = vld [vmem:[#allocation5 + $0x8] sm:$0xff]   ;;  %vm116_vm1 = vcmask 523264   ;;  %v792_v4 = vld [vmem:[#allocation5] sm:$0xff]   ;;  %v75_v5 = vld [vmem:[#allocation2] sm:$0xff]  ;;  %s941_s19 = smov [#allocation10]  }
  0x36   :  { %718 = vmatprep.subr.bf16.mxu1 %v939_v0  ;;  %734 = vmatprep.mubr.msk.bf16.mxu1 %vm940_vm0, %v939_v0  ;;  %v84_v6 = vpack.c.bf16 %v75_v5, %v75_v5  ;;  %v793_v7 = vld [vmem:[#allocation5 + $0x78] sm:$0xff]   ;;  %v794_v8 = vld [vmem:[#allocation5 + $0x70] sm:$0xff]   ;;  %v795_v9 = vld [vmem:[#allocation5 + $0x68] sm:$0xff]   ;;  %v185_v41 = vshrl.u32 %v184_v40, 7  ;;  %s625_s20 = sshll.u32 %s941_s19, 4  ;;  %s626_s20 = int_to_ptr.vmem [resolvable:$true] %s625_s20 }
  0x37   :  { %707 = vmatpush3.bf16.msra.mxu0 %v789_v1  ;;  %719 = vmatpush3.bf16.msra.mxu1 %v793_v7  ;;  %v796_v10 = vld [vmem:[#allocation5 + $0x60] sm:$0xff]   ;;  %v797_v11 = vld [vmem:[#allocation5 + $0x58] sm:$0xff]   ;;  %v798_v12 = vld [vmem:[#allocation5 + $0x50] sm:$0xff]   ;;  %s903_s21 = scalar_lea.vmem %s626_s20, 128  ;;  %p908_p7 = scmp.lt.s32.totalorder %s626_s20, %s626_s20 }
  0x38   :  { %708 = vmatprep.subr.bf16.mxu0 %v939_v0  ;;  %720 = vmatprep.subr.bf16.mxu1 %v939_v0  ;;  %v799_v13 = vld [vmem:[#allocation5 + $0x48] sm:$0xff]   ;;  %v800_v14 = vld [vmem:[#allocation5 + $0x40] sm:$0xff]   ;;  %v179_v42 = vld [vmem:[%s1040_s3] sm:$0x1]  ;;  %v1007_v43 = vsub.s32 0, %v185_v41  ;;  %p904_p6 = scmp.ne.s32.totalorder %s626_s20, %s903_s21  ;;  %p909_p8 = scmp.lt.s32.totalorder %s903_s21, %s903_s21 }
  0x39   :  { %v636_v15 = vld [vmem:[#allocation7] ss:$0 sm:$0xff]  ;;  %v642_v47 = vld [vmem:[#allocation8] ss:$0 sm:$0xff]  ;;  %v801_v51 = vld [vmem:[#allocation5 + $0xb8] sm:$0xff]  }
  0x3a   :  { %v802_v52 = vld [vmem:[#allocation5 + $0xb0] sm:$0xff]   ;;  %v803_v53 = vld [vmem:[#allocation5 + $0xa8] sm:$0xff]   ;;  %v804_v54 = vld [vmem:[#allocation5 + $0xa0] sm:$0xff]   ;;  %p910_p9 = por %p909_p8, %p908_p7 }
  0x3b   :  { %709 = vmatpush3.bf16.msra.mxu0 %v790_v2  ;;  %721 = vmatpush3.bf16.msra.mxu1 %v794_v8  ;;  %v805_v55 = vld [vmem:[#allocation5 + $0x98] sm:$0xff]   ;;  %v806_v56 = vld [vmem:[#allocation5 + $0x90] sm:$0xff]   ;;  %v807_v57 = vld [vmem:[#allocation5 + $0x88] sm:$0xff]  }
  0x3c   :  { %710 = vmatprep.subr.bf16.mxu0 %v939_v0  ;;  %722 = vmatprep.subr.bf16.mxu1 %v939_v0  ;;  %v808_v58 = vld [vmem:[#allocation5 + $0x80] sm:$0xff]   ;;  %p911_p10 = pnand %p910_p9, %p904_p6 }
  0x3d   :  { %v643_v59 = vld [vmem:[#allocation7 + $0x1] ss:$0 sm:$0xff] }
  0x3f   :  { %711 = vmatpush3.bf16.msra.mxu0 %v791_v3  ;;  %723 = vmatpush3.bf16.msra.mxu1 %v795_v9 }
  0x40   :  { %712 = vmatprep.subr.bf16.mxu0 %v939_v0  ;;  %724 = vmatprep.subr.bf16.mxu1 %v939_v0 }
  0x43   :  { %713 = vmatpush3.bf16.msra.mxu0 %v792_v4  ;;  %725 = vmatpush3.bf16.msra.mxu1 %v796_v10 }
  0x44   :  { %738 = vmatprep.subr.bf16.mxu0 %v939_v0  ;;  %726 = vmatprep.subr.bf16.mxu1 %v939_v0 }
  0x46   :  { %715 = vmatmul.mubr.msk.bf16.vlgmr.msra.gmra.mxu0 %vm116_vm1, %v84_v6 }
  0x47   :  { %754 = vmatprep.mubr.msk.bf16.mxu0 %vm940_vm0, %v939_v0  ;;  %727 = vmatpush3.bf16.msra.mxu1 %v797_v11 }
  0x48   :  { %728 = vmatprep.subr.bf16.mxu1 %v939_v0  ;;  %739 = vmatpush3.bf16.msra.mxu0 %v801_v51 }
  0x49   :  { %740 = vmatprep.subr.bf16.mxu0 %v939_v0 }
  0x4b   :  { %729 = vmatpush3.bf16.msra.mxu1 %v798_v12 }
  0x4c   :  { %730 = vmatprep.subr.bf16.mxu1 %v939_v0  ;;  %741 = vmatpush3.bf16.msra.mxu0 %v802_v52 }
  0x4d   :  { %742 = vmatprep.subr.bf16.mxu0 %v939_v0 }
  0x4f   :  { %731 = vmatpush3.bf16.msra.mxu1 %v799_v13 }
  0x50   :  { %732 = vmatprep.subr.bf16.mxu1 %v939_v0  ;;  %743 = vmatpush3.bf16.msra.mxu0 %v803_v53 }
  0x51   :  { %744 = vmatprep.subr.bf16.mxu0 %v939_v0 }
  0x53   :  { %733 = vmatpush3.bf16.msra.mxu1 %v800_v14 }
  0x54   :  { %758 = vmatprep.subr.bf16.mxu1 %v939_v0  ;;  %745 = vmatpush3.bf16.msra.mxu0 %v804_v54 }
  0x55   :  { %746 = vmatprep.subr.bf16.mxu0 %v939_v0 }
  0x58   :  { %747 = vmatpush3.bf16.msra.mxu0 %v805_v55 }
  0x59   :  { %748 = vmatprep.subr.bf16.mxu0 %v939_v0 }
  0x5c   :  { %749 = vmatpush3.bf16.msra.mxu0 %v806_v56 }
  0x5d   :  { %750 = vmatprep.subr.bf16.mxu0 %v939_v0 }
  0x60   :  { %751 = vmatpush3.bf16.msra.mxu0 %v807_v57 }
  0x61   :  { %752 = vmatprep.subr.bf16.mxu0 %v939_v0 }
  0x64   :  { %753 = vmatpush3.bf16.msra.mxu0 %v808_v58 }
 0x106   :  { %v154_v16 = vpop.f32.mrf.mxu0 }
 0x107   :  { %v155_v17 = vadd.f32 %v636_v15, %v154_v16 }
 0x108   :  { %v716_v18 = vpop.f32.mrf.mxu0 }
 0x109   :  { %v160_v19 = vmul.f32 0.2, %v155_v17 }
 0x10a   :  { %v157_v20 = vpop.f32.mrf.mxu0 }
 0x10b   :  { %v161_v21 = vmax.f32 %v155_v17, %v160_v19 }
 0x10c   :  { %v717_v22 = vpop.f32.mrf.mxu0 }
 0x10d   :  { %v162_v23 = vrot.slane %v161_v21, 4 }
 0x10f   :  { %v163_v24 = vadd.f32 %v162_v23, %v161_v21 }
 0x111   :  { %v164_v25 = vrot.slane %v163_v24, 2 }
 0x113   :  { %v165_v26 = vadd.f32 %v164_v25, %v163_v24  ;;  %v653_v25 = vld [vmem:[#allocation8 + $0x1] ss:$0 sm:$0xff] }
 0x115   :  { %v166_v27 = vrot.slane %v165_v26, 1 }
 0x117   :  { %v167_v28 = vadd.f32 %v166_v27, %v165_v26 }
 0x119   :  { %v169_v29 = vmul.f32 0.125, %v167_v28 }
 0x11b   :  { %v170_v30 = vsub.f32 %v161_v21, %v169_v29  ;;  %v652_v21 = vld [vmem:[%s1040_s3 + $0x1] sm:$0x1] }
 0x11c   :  { %v809_v29 = vld [vmem:[#allocation5 + $0xf8] sm:$0xff]  }
 0x11d   :  { %v171_v31 = vmul.f32 %v170_v30, %v170_v30 }
 0x11f   :  { %v172_v32 = vrot.slane %v171_v31, 4 }
 0x121   :  { %v173_v33 = vadd.f32 %v172_v32, %v171_v31  ;;  %v811_v31 = vld [vmem:[#allocation5 + $0xe8] sm:$0xff]   ;;  %v812_v32 = vld [vmem:[#allocation5 + $0xe0] sm:$0xff]  }
 0x123   :  { %v174_v34 = vrot.slane %v173_v33, 2 }
 0x125   :  { %v175_v35 = vadd.f32 %v174_v34, %v173_v33  ;;  %v813_v33 = vld [vmem:[#allocation5 + $0xd8] sm:$0xff]   ;;  %v814_v34 = vld [vmem:[#allocation5 + $0xd0] sm:$0xff]  }
 0x127   :  { %v176_v36 = vrot.slane %v175_v35, 1 }
 0x129   :  { %v177_v37 = vadd.f32 %v176_v36, %v175_v35  ;;  %v815_v35 = vld [vmem:[#allocation5 + $0xc8] sm:$0xff]   ;;  %v816_v36 = vld [vmem:[#allocation5 + $0xc0] sm:$0xff]  }
 0x12b   :  { %v178_v38 = vmul.f32 0.125, %v177_v37  ;;  %v654_v37 = vld [vmem:[#allocation7 + $0x2] ss:$0 sm:$0xff] }
 0x12d   :  { %v180_v39 = vadd.f32 1e-05, %v178_v38 }
 0x12f   :  { %817 = vrsqrt.f32 %v180_v39 }
 0x13c   :  { %v818_v44 = vpop.eup %817 }
 0x13d   :  { %v182_v45 = vmul.f32 %v818_v44, %v179_v42 }
 0x13f   :  { %v187_v46 = vrot.slane %v182_v45, %v1007_v43 }
 0x141   :  { %v189_v48 = vmul.f32 %v187_v46, %v170_v30  ;;  %v810_v30 = vld [vmem:[#allocation5 + $0xf0] sm:$0xff]  }
 0x143   :  { %v197_v49 = vadd.f32 %v642_v47, %v189_v48 }
 0x145   :  { %v215_v50 = vpack.c.bf16 %v197_v49, %v197_v49 }
 0x147   :  { %735 = vmatmul.mubr.bf16.vlgmr.msra.gmra.mxu1 %v215_v50 }
 0x148   :  { %774 = vmatprep.mubr.msk.bf16.mxu1 %vm940_vm0, %v939_v0  ;;  %759 = vmatpush3.bf16.msra.mxu1 %v809_v29 }
 0x149   :  { %760 = vmatprep.subr.bf16.mxu1 %v939_v0 }
 0x14c   :  { %761 = vmatpush3.bf16.msra.mxu1 %v810_v30 }
 0x14d   :  { %762 = vmatprep.subr.bf16.mxu1 %v939_v0 }
 0x150   :  { %763 = vmatpush3.bf16.msra.mxu1 %v811_v31 }
 0x151   :  { %764 = vmatprep.subr.bf16.mxu1 %v939_v0 }
 0x154   :  { %765 = vmatpush3.bf16.msra.mxu1 %v812_v32 }
 0x155   :  { %766 = vmatprep.subr.bf16.mxu1 %v939_v0 }
 0x158   :  { %767 = vmatpush3.bf16.msra.mxu1 %v813_v33 }
 0x159   :  { %768 = vmatprep.subr.bf16.mxu1 %v939_v0 }
 0x15c   :  { %769 = vmatpush3.bf16.msra.mxu1 %v814_v34 }
 0x15d   :  { %770 = vmatprep.subr.bf16.mxu1 %v939_v0 }
 0x160   :  { %771 = vmatpush3.bf16.msra.mxu1 %v815_v35 }
 0x161   :  { %772 = vmatprep.subr.bf16.mxu1 %v939_v0 }
 0x164   :  { %773 = vmatpush3.bf16.msra.mxu1 %v816_v36 }
 0x207   :  { %v306_v60 = vpop.f32.mrf.mxu1 }
 0x208   :  { %v307_v61 = vadd.f32 %v643_v59, %v306_v60 }
 0x209   :  { %v736_v62 = vpop.f32.mrf.mxu1 }
 0x20a   :  { %v312_v63 = vmul.f32 0.2, %v307_v61  ;;  %v663_v62 = vld [vmem:[%s1040_s3 + $0x2] sm:$0x1] }
 0x20b   :  { %v309_v1 = vpop.f32.mrf.mxu1 }
 0x20c   :  { %v313_v2 = vmax.f32 %v307_v61, %v312_v63 }
 0x20d   :  { %v737_v3 = vpop.f32.mrf.mxu1 }
 0x20e   :  { %v314_v4 = vrot.slane %v313_v2, 4  ;;  %v664_v3 = vld [vmem:[#allocation8 + $0x2] ss:$0 sm:$0xff] }
 0x210   :  { %v315_v5 = vadd.f32 %v314_v4, %v313_v2 }
 0x212   :  { %v316_v6 = vrot.slane %v315_v5, 2 }
 0x214   :  { %v317_v7 = vadd.f32 %v316_v6, %v315_v5 }
 0x216   :  { %v318_v8 = vrot.slane %v317_v7, 1 }
 0x218   :  { %v319_v9 = vadd.f32 %v318_v8, %v317_v7  ;;  %v665_v7 = vld [vmem:[#allocation7 + $0x3] ss:$0 sm:$0xff] }
 0x21a   :  { %v320_v10 = vmul.f32 0.125, %v319_v9 }
 0x21c   :  { %v321_v11 = vsub.f32 %v313_v2, %v320_v10 }
 0x21e   :  { %v322_v12 = vmul.f32 %v321_v11, %v321_v11 }
 0x220   :  { %v323_v13 = vrot.slane %v322_v12, 4 }
 0x222   :  { %v324_v14 = vadd.f32 %v323_v13, %v322_v12 }
 0x224   :  { %v325_v15 = vrot.slane %v324_v14, 2 }
 0x226   :  { %v326_v16 = vadd.f32 %v325_v15, %v324_v14 }
 0x228   :  { %v327_v17 = vrot.slane %v326_v16, 1 }
 0x22a   :  { %v328_v18 = vadd.f32 %v327_v17, %v326_v16 }
 0x22c   :  { %v329_v19 = vmul.f32 0.125, %v328_v18 }
 0x22e   :  { %v332_v20 = vadd.f32 1e-05, %v329_v19 }
 0x230   :  { %819 = vrsqrt.f32 %v332_v20 }
 0x23d   :  { %v820_v22 = vpop.eup %819 }
 0x23e   :  { %v334_v23 = vmul.f32 %v820_v22, %v652_v21 }
 0x240   :  { %v339_v24 = vrot.slane %v334_v23, %v1007_v43 }
 0x242   :  { %v341_v26 = vmul.f32 %v339_v24, %v321_v11 }
 0x244   :  { %v350_v27 = vadd.f32 %v653_v25, %v341_v26 }
 0x246   :  { %v368_v28 = vpack.c.bf16 %v350_v27, %v350_v27 }
 0x248   :  { %755 = vmatmul.mubr.bf16.vlgmr.msra.gmra.mxu0 %v368_v28 }
 0x308   :  { %v459_v38 = vpop.f32.mrf.mxu0 }
 0x309   :  { %v460_v39 = vadd.f32 %v654_v37, %v459_v38 }
 0x30a   :  { %v756_v40 = vpop.f32.mrf.mxu0 }
 0x30b   :  { %v465_v41 = vmul.f32 0.2, %v460_v39 }
 0x30c   :  { %v462_v42 = vpop.f32.mrf.mxu0 }
 0x30d   :  { %v466_v44 = vmax.f32 %v460_v39, %v465_v41 }
 0x30e   :  { %v757_v45 = vpop.f32.mrf.mxu0 }
 0x30f   :  { %v467_v46 = vrot.slane %v466_v44, 4 }
 0x311   :  { %v468_v47 = vadd.f32 %v467_v46, %v466_v44 }
 0x313   :  { %v469_v48 = vrot.slane %v468_v47, 2 }
 0x315   :  { %v470_v49 = vadd.f32 %v469_v48, %v468_v47 }
 0x317   :  { %v471_v50 = vrot.slane %v470_v49, 1 }
 0x319   :  { %v472_v51 = vadd.f32 %v471_v50, %v470_v49 }
 0x31b   :  { %v473_v52 = vmul.f32 0.125, %v472_v51 }
 0x31d   :  { %v474_v53 = vsub.f32 %v466_v44, %v473_v52 }
 0x31f   :  { %v475_v54 = vmul.f32 %v474_v53, %v474_v53 }
 0x321   :  { %v476_v0 = vrot.slane %v475_v54, 4 }
 0x323   :  { %v477_v55 = vadd.f32 %v476_v0, %v475_v54 }
 0x325   :  { %v478_v56 = vrot.slane %v477_v55, 2 }
 0x327   :  { %v479_v57 = vadd.f32 %v478_v56, %v477_v55 }
 0x329   :  { %v480_v58 = vrot.slane %v479_v57, 1 }
 0x32b   :  { %v481_v59 = vadd.f32 %v480_v58, %v479_v57 }
 0x32d   :  { %v482_v60 = vmul.f32 0.125, %v481_v59 }
 0x32f   :  { %v485_v61 = vadd.f32 1e-05, %v482_v60 }
 0x331   :  { %821 = vrsqrt.f32 %v485_v61 }
 0x33e   :  { %v822_v63 = vpop.eup %821 }
 0x33f   :  { %v487_v1 = vmul.f32 %v822_v63, %v663_v62 }
 0x341   :  { %v492_v2 = vrot.slane %v487_v1, %v1007_v43 }
 0x343   :  { %v494_v4 = vmul.f32 %v492_v2, %v474_v53 }
 0x345   :  { %v503_v5 = vadd.f32 %v664_v3, %v494_v4 }
 0x347   :  { %v521_v6 = vpack.c.bf16 %v503_v5, %v503_v5 }
 0x349   :  { %775 = vmatmul.mubr.bf16.vlgmr.msra.gmra.mxu1 %v521_v6 }
 0x409   :  { %v612_v8 = vpop.f32.mrf.mxu1 }
 0x40a   :  { %v613_v9 = vadd.f32 %v665_v7, %v612_v8 }
 0x40b   :  { %v776_v10 = vpop.f32.mrf.mxu1 }
 0x40c   :  { %618 = vst [vmem:[#allocation10] sm:$0xff] %v613_v9 }
 0x40d   :  { %v615_v11 = vpop.f32.mrf.mxu1 }
 0x40e   :  { %914 = shalt.err (!%p911_p10)
}
 0x40f   :  { %628 = dma.vmem_to_hbm [thread:$0]  %s626_s20, 128, %s1042_s5, [#allocation4]   ;;  %v777_v43 = vpop.f32.mrf.mxu1 }
 0x410   :  { %929 = dma.done.wait [#allocation4], 128  }
 0x411   :  { %930 = vsyncadd [#allocation4], 4294967168 }
 0x412   :  { %632 = vsyncpa [#allocation3], 1 }
 0x413   :  { %633 = vsyncpa [#allocation6], 1 }
 0x414   :  { %634 = vsyncpa [#allocation9], 1 }
 0x415   :  { %635 = vsyncpa [#allocation4], 1 }

</bundles_post_ra>
